<compile_context>
chip_gen: v6e
topology: v6e:2x2x1
jax: 0.10.0
libtpu: 0.0.40
codegen_flags: <defaults>
</compile_context>

<pallas_src>
import jax
import jax.numpy as jnp
from jax import lax
from jax.experimental import pallas as pl
from jax.experimental.pallas import tpu as pltpu


def _linear_kernel(x_ref, w_ref, b_ref, o_ref):
    """One (tile_b, tile_n) output tile of y = x @ W.T + b.

    x_ref: (tile_b, d_in)   VMEM
    w_ref: (tile_n, d_in)   VMEM   -- PyTorch (out, in) layout, no transpose
    b_ref: (1, tile_n)      VMEM
    o_ref: (tile_b, tile_n) VMEM
    """
    acc = lax.dot_general(
        x_ref[...], w_ref[...],
        dimension_numbers=(((1,), (1,)), ((), ())),   # contract d_in with d_in
        preferred_element_type=jnp.float32,
    )
    o_ref[...] = (acc + b_ref[...].astype(jnp.float32)).astype(o_ref.dtype)


def _vmem_bytes(tile_b, tile_n, d_in, in_bytes, out_bytes):
    # Double-buffered pipeline estimate for every operand.
    return 2 * (tile_b * d_in * in_bytes        # x tile
                + tile_n * d_in * in_bytes      # W tile
                + tile_n * 4                    # bias tile
                + tile_b * tile_n * out_bytes)  # out tile


def _linear_pallas(x, weight, bias, tile_b=None, tile_n=None):
    B, d_in = x.shape
    d_out = weight.shape[0]

    in_bytes = x.dtype.itemsize
    out_bytes = x.dtype.itemsize
    sub = 8 if in_bytes >= 4 else 16            # sublane multiple

    # ---- tile_b: big enough that the batch axis pipelines / feeds both TCs.
    if tile_b is None:
        tile_b = 512 if in_bytes == 2 else 256
    tile_b = max(sub, (tile_b // sub) * sub)
    if tile_b >= B:
        tile_b = B                              # full-dim block: always legal

    # ---- tile_n: lane-dense (multiple of 128) weight / output tiles.
    if tile_n is None:
        tile_n = 512
    tile_n = max(128, (tile_n // 128) * 128)
    if tile_n >= d_out:
        tile_n = d_out                          # full-dim block: always legal

    # ---- VMEM budget, conservative enough for v7x's 64 MiB physical VMEM.
    budget = 48 * 1024 * 1024
    while (_vmem_bytes(tile_b, tile_n, d_in, in_bytes, out_bytes) > budget
           and tile_n > 128):
        tile_n = max(128, ((tile_n // 2) // 128) * 128)
    while (_vmem_bytes(tile_b, tile_n, d_in, in_bytes, out_bytes) > budget
           and tile_b > sub):
        tile_b = max(sub, ((tile_b // 2) // sub) * sub)

    grid_n = pl.cdiv(d_out, tile_n)
    grid_b = pl.cdiv(B, tile_b)

    bias2d = bias.reshape(1, d_out)             # metadata only

    cost = pl.CostEstimate(
        flops=2 * B * d_in * d_out,
        transcendentals=0,
        bytes_accessed=(B * d_in * in_bytes
                        + d_out * d_in * in_bytes
                        + d_out * bias.dtype.itemsize
                        + B * d_out * out_bytes),
    )

    # ---- Shape-adaptive loop order: put the operand that would otherwise be
    # re-streamed the most on the OUTER axis so it is DMA'd only once.
    #   N-outer: W fetched once total, x re-streamed grid_n times.
    #   B-outer: x fetched once total, W re-streamed grid_b times.
    n_outer = B * (grid_n - 1) <= d_out * (grid_b - 1)
    if n_outer:
        grid = (grid_n, grid_b)
        x_map = lambda j, i: (i, 0)
        w_map = lambda j, i: (j, 0)
        b_map = lambda j, i: (0, j)
        o_map = lambda j, i: (i, j)
    else:
        grid = (grid_b, grid_n)
        x_map = lambda i, j: (i, 0)
        w_map = lambda i, j: (j, 0)
        b_map = lambda i, j: (0, j)
        o_map = lambda i, j: (i, j)

    y = pl.pallas_call(
        _linear_kernel,
        out_shape=jax.ShapeDtypeStruct((B, d_out), x.dtype),
        grid_spec=pl.GridSpec(
            grid=grid,
            in_specs=[
                pl.BlockSpec((tile_b, d_in), x_map),     # x
                pl.BlockSpec((tile_n, d_in), w_map),     # W (out, in)
                pl.BlockSpec((1, tile_n), b_map),        # bias
            ],
            out_specs=pl.BlockSpec((tile_b, tile_n), o_map),
        ),
        compiler_params=pltpu.CompilerParams(
            dimension_semantics=("parallel", "parallel"),
            vmem_limit_bytes=60 * 1024 * 1024,
        ),
        cost_estimate=cost,
    )(x, weight, bias2d)
    return y


def single_categorical_recon_head(x, weight, bias, *, tile_b=None, tile_n=None):
    """Forward of SingleCategoricalReconHead.

    x:      (B, input_dim)
    weight: (output_dim, input_dim)  -- PyTorch nn.Linear layout, used as-is
    bias:   (output_dim,)
    returns (B, output_dim // 2, 2)
    """
    B, _ = x.shape
    d_out = weight.shape[0]
    assert d_out % 2 == 0, "output_dim must be even for .view(B, -1, 2)"

    y = _linear_pallas(x, weight, bias, tile_b, tile_n)

    # TODO(synk): .view(B, -1, 2) is pure metadata; kept in JAX glue on purpose.
    return y.reshape(B, d_out // 2, 2)


if __name__ == "__main__":
    def make_inputs(key, batch, input_dim, output_dim, dtype=jnp.float32):
        kx, kw, kb = jax.random.split(key, 3)
        x = jax.random.normal(kx, (batch, input_dim), dtype=dtype)
        bound = 1.0 / (input_dim ** 0.5)   # PyTorch nn.Linear init style
        w = jax.random.uniform(kw, (output_dim, input_dim),
                               minval=-bound, maxval=bound, dtype=dtype)
        b = jax.random.uniform(kb, (output_dim,),
                               minval=-bound, maxval=bound, dtype=dtype)
        return x, w, b

    key = jax.random.PRNGKey(0)

    # 1) Module-sized tiny config (B=2, input_dim=32, output_dim=8):
    #    single full-extent block, still runs through the Pallas kernel.
    x_s, w_s, b_s = make_inputs(key, batch=2, input_dim=32, output_dim=8)
    out_s = jax.block_until_ready(single_categorical_recon_head(x_s, w_s, b_s))
    ref_s = (jnp.dot(x_s, w_s.T, precision=lax.Precision.HIGHEST)
             + b_s).reshape(2, -1, 2)
    assert out_s.shape == (2, 4, 2), out_s.shape
    assert jnp.allclose(out_s, ref_s, atol=5e-3, rtol=5e-3)

    # 2) A shape that exercises tiling over batch and d_out.
    B, d_in, d_out = 256, 256, 1024
    x_l, w_l, b_l = make_inputs(jax.random.PRNGKey(0), B, d_in, d_out)
    out_l = single_categorical_recon_head(x_l, w_l, b_l, tile_b=128, tile_n=256)
    out_l = jax.block_until_ready(out_l)
    ref_l = (jnp.dot(x_l, w_l.T, precision=lax.Precision.HIGHEST)
             + b_l).reshape(B, -1, 2)
    assert out_l.shape == (B, d_out // 2, 2), out_l.shape
    assert jnp.allclose(out_l, ref_l, atol=5e-3, rtol=5e-3)

    print("KERNEL_OK")
</pallas_src>

<mosaic_0001>
module attributes {stable_mosaic.version = 11 : i64} {
  func.func @_linear_kernel(%arg0: i32, %arg1: i32, %arg2: memref<2x32xf32, #tpu.memory_space<vmem>>, %arg3: memref<8x32xf32, #tpu.memory_space<vmem>>, %arg4: memref<1x8xf32, #tpu.memory_space<vmem>>, %arg5: memref<2x8xf32, #tpu.memory_space<vmem>>) attributes {dimension_semantics = [#tpu.dimension_semantics<parallel>, #tpu.dimension_semantics<parallel>], iteration_bounds = array<i64: 1, 1>, scalar_prefetch = 0 : i64, scratch_operands = 0 : i64, tpu.core_type = #tpu.core_type<tc>, window_params = [{transform_indices = @transform_0, window_bounds = array<i64: 2, 32>}, {transform_indices = @transform_1, window_bounds = array<i64: 8, 32>}, {transform_indices = @transform_2, window_bounds = array<i64: 1, 8>}, {transform_indices = @transform_3, window_bounds = array<i64: 2, 8>}]} {
    %c0 = arith.constant 0 : index
    %c0_0 = arith.constant 0 : index
    %0 = vector.load %arg2[%c0, %c0_0] : memref<2x32xf32, #tpu.memory_space<vmem>>, vector<2x32xf32>
    %c0_1 = arith.constant 0 : index
    %c0_2 = arith.constant 0 : index
    %1 = vector.load %arg3[%c0_1, %c0_2] : memref<8x32xf32, #tpu.memory_space<vmem>>, vector<8x32xf32>
    %cst = arith.constant dense<0.000000e+00> : vector<2x8xf32>
    %2 = tpu.matmul %0, %1, %cst {dimension_numbers = #tpu.dot_dimension_numbers<[1], [1], [0], [0], [0, 0, 1, 0], [], []>} : vector<2x32xf32>, vector<8x32xf32>, vector<2x8xf32> -> vector<2x8xf32>
    %c0_3 = arith.constant 0 : index
    %c0_4 = arith.constant 0 : index
    %3 = vector.load %arg4[%c0_3, %c0_4] : memref<1x8xf32, #tpu.memory_space<vmem>>, vector<1x8xf32>
    %4 = vector.broadcast %3 : vector<1x8xf32> to vector<2x8xf32>
    %5 = arith.addf %2, %4 : vector<2x8xf32>
    %c0_5 = arith.constant 0 : index
    %c0_6 = arith.constant 0 : index
    %6 = vector.load %arg5[%c0_5, %c0_6] : memref<2x8xf32, #tpu.memory_space<vmem>>, vector<2x8xf32>
    tpu.vector_store %arg5[%c0_5, %c0_6], %5 {strides = array<i32>} : memref<2x8xf32, #tpu.memory_space<vmem>>, vector<2x8xf32>,
    return
  }
  func.func @transform_0(%arg0: i32, %arg1: i32) -> (i32, i32) {
    %c0_i32 = arith.constant 0 : i32
    %c0_i32_0 = arith.constant 0 : i32
    return %arg1, %c0_i32 : i32, i32
  }
  func.func @transform_1(%arg0: i32, %arg1: i32) -> (i32, i32) {
    %c0_i32 = arith.constant 0 : i32
    %c0_i32_0 = arith.constant 0 : i32
    return %arg0, %c0_i32 : i32, i32
  }
  func.func @transform_2(%arg0: i32, %arg1: i32) -> (i32, i32) {
    %c0_i32 = arith.constant 0 : i32
    %c0_i32_0 = arith.constant 0 : i32
    return %c0_i32, %arg0 : i32, i32
  }
  func.func @transform_3(%arg0: i32, %arg1: i32) -> (i32, i32) {
    %c0_i32 = arith.constant 0 : i32
    return %arg1, %arg0 : i32, i32
  }
}

</mosaic_0001>

<bundles_post_ra>
// kernel: tpu_custom_call.1
= control target key start
LH: loop header
LB: loop body
LE: loop exit
PB: predicated region body
PF: predicated region fallthrough
CT: control target
= control target key end

     0   :  { %8 = vsyncpa [#allocation3], 0  ;;  %s261_s0 = inlined_call_operand.hbm [shape: f32[2,32], index: 0, kind: input, shape index: {}]   ;;  %s262_s1 = inlined_call_operand.hbm [shape: f32[8,32], index: 1, kind: input, shape index: {}]   ;;  %s263_s2 = inlined_call_operand.vmem [shape: f32[1,8], index: 2, kind: input, shape index: {}]   ;;  %s264_s3 = inlined_call_operand.hbm [shape: f32[2,8], index: 3, kind: output, shape index: {}]  }
   0x1   :  { %9 = vsyncpa [#allocation6], 0 }
   0x2   :  { %10 = vsyncpa [#allocation4], 0  ;;  %s224_s12 = smov [#allocation2]   ;;  %s225_s14 = smov [#allocation5]  }
   0x3   :  { %s17_s13 = sshll.u32 %s224_s12, 4  ;;  %s27_s15 = sshll.u32 %s225_s14, 4  ;;  %s18_s13 = int_to_ptr.vmem [resolvable:$true] %s17_s13  ;;  %s28_s15 = int_to_ptr.vmem [resolvable:$true] %s27_s15 }
   0x4   :  { %s166_s16 = scalar_lea.vmem %s18_s13, 32  ;;  %p171_p1 = scmp.lt.s32.totalorder %s18_s13, %s18_s13 }
   0x5   :  { %p167_p0 = scmp.ne.s32.totalorder %s18_s13, %s166_s16  ;;  %p172_p2 = scmp.lt.s32.totalorder %s166_s16, %s166_s16 }
   0x7   :  { %p173_p3 = por %p172_p2, %p171_p1 }
   0x9   :  { %p174_p4 = pnand %p173_p3, %p167_p0 }
   0xb   :  { %177 = shalt.err (!%p174_p4)
}
   0xc   :  { %20 = dma.hbm_to_vmem [thread:$0]  %s261_s0, 32, %s18_s13, [#allocation3]  }
   0xd   :  { %s186_s19 = scalar_lea.vmem %s28_s15, 128  ;;  %p191_p6 = scmp.lt.s32.totalorder %s28_s15, %s28_s15 }
   0xe   :  { %p187_p5 = scmp.ne.s32.totalorder %s28_s15, %s186_s19  ;;  %p192_p7 = scmp.lt.s32.totalorder %s186_s19, %s186_s19 }
  0x10   :  { %p193_p8 = por %p192_p7, %p191_p6 }
  0x12   :  { %p194_p9 = pnand %p193_p8, %p187_p5 }
  0x14   :  { %197 = shalt.err (!%p194_p9)
}
  0x15   :  { %30 = dma.hbm_to_vmem [thread:$0]  %s262_s1, 128, %s28_s15, [#allocation6]  }
  0x16   :  { %218 = dma.done.wait [#allocation3], 32  }
  0x17   :  { %219 = vsyncadd [#allocation3], 4294967264 }
  0x18   :  { %220 = dma.done.wait [#allocation6], 128  }
  0x19   :  { %221 = vsyncadd [#allocation6], 4294967168  ;;  %v226_v0 = vmov 0.0   ;;  %vm227_vm0 = vmmov 0   ;;  %vm48_vm1 = vcmask 261120   ;;  %v40_v1 = vld [vmem:[#allocation5] sm:$0xff] }
  0x1a   :  { %148 = vmatprep.subr.mxu0 %v226_v0  ;;  %150 = vmatprep.mubr.msk.f32.mxu0 %vm227_vm0, %v226_v0  ;;  %v39_v2 = vld [vmem:[#allocation2] sm:$0x3]  ;;  %s228_s23 = smov [#allocation7]   ;;  %vm125_vm2 = vcmask 58368  }
  0x1b   :  { %149 = vmatpush3.xpose.msk.msra.mxu0 %vm48_vm1, %v40_v1  ;;  %v143_v3 = vld [vmem:[%s263_s2] ss:$0 sm:$0xff]  ;;  %s133_s24 = sshll.u32 %s228_s23, 4  ;;  %s134_s24 = int_to_ptr.vmem [resolvable:$true] %s133_s24 }
  0x1c   :  { %s198_s1 = scalar_lea.vmem %s134_s24, 32  ;;  %p203_p11 = scmp.lt.s32.totalorder %s134_s24, %s134_s24 }
  0x1d   :  { %p199_p10 = scmp.ne.s32.totalorder %s134_s24, %s198_s1  ;;  %p204_p12 = scmp.lt.s32.totalorder %s198_s1, %s198_s1 }
  0x1e   :  { %151 = vmatmul.mubr.msk.f32.vlgmr.msra.gmra.mxu0 %vm48_vm1, %v39_v2 }
  0x1f   :  { %p205_p13 = por %p204_p12, %p203_p11 }
  0x21   :  { %p206_p0 = pnand %p205_p13, %p199_p10 }
  0xde   :  { %v121_v4 = vpop.f32.mrf.mxu0 }
  0xdf   :  { %v122_v5 = vadd.f32 %v143_v3, %v121_v4 }
  0xe0   :  { %v152_v6 = vpop.f32.mrf.mxu0 }
  0xe1   :  { %126 = vst.msk [vmem:[#allocation7] sm:$0x3] %vm125_vm2, %v122_v5 }
  0xe2   :  { %209 = shalt.err (!%p206_p0)
}
  0xe3   :  { %136 = dma.vmem_to_hbm [thread:$0]  %s134_s24, 32, %s264_s3, [#allocation4]  }
  0xe4   :  { %222 = dma.done.wait [#allocation4], 32  }
  0xe5   :  { %223 = vsyncadd [#allocation4], 4294967264 }
  0xe6   :  { %140 = vsyncpa [#allocation3], 1 }
  0xe7   :  { %141 = vsyncpa [#allocation6], 1 }
  0xe8   :  { %142 = vsyncpa [#allocation4], 1 }

</bundles_post_ra>
